<compile_context>
chip_gen: v7x
topology: tpu7x:2x2x1
jax: 0.10.0
libtpu: 0.0.40
codegen_flags: <defaults>
</compile_context>

<pallas_src>
import jax
import jax.numpy as jnp
from jax import lax
from jax.experimental import pallas as pl
from jax.experimental.pallas import tpu as pltpu


def _tv_jax(x: jax.Array, reduce_var: bool = True) -> jax.Array:
    """Plain-JAX mirror of the PyTorch reference (also used as fallback)."""
    b, c, h, w = x.shape
    var_horz = jnp.sum(jnp.abs(x[..., 1:] - x[..., :-1]))
    var_vert = jnp.sum(jnp.abs(x[..., 1:, :] - x[..., :-1, :]))
    n_horz = c * h * (w - 1) if reduce_var else 1
    n_vert = c * (h - 1) * w if reduce_var else 1
    var = var_horz / n_horz + var_vert / n_vert
    return (var / b).astype(x.dtype)


def _make_tv_kernel(p: int, w: int, bc: int, nj: int, need_mask: bool):
    """Kernel over blocks of `p` flattened planes of length H*W."""

    def kernel(x_ref, acc_h_ref, acc_v_ref):
        # Accumulator blocks are resident across the inner ("arbitrary") grid
        # axis; initialize them on the first visit of each per-core row.
        @pl.when(pl.program_id(1) == 0)
        def _init():
            acc_h_ref[...] = jnp.zeros_like(acc_h_ref)
            acc_v_ref[...] = jnp.zeros_like(acc_v_ref)

        # For bf16 inputs on v6e/v7x the diffs could stay in bf16 and only the
        # accumulation be f32; f32 is kept here for simplicity/accuracy.
        x = x_ref[...].astype(jnp.float32)                 # (p, H*W)

        # Horizontal neighbours: flattened positions c and c+1 lie in the same
        # image row iff (c % W) != W-1.
        dh = jnp.abs(x[:, 1:] - x[:, :-1])                 # (p, H*W - 1)
        col = lax.broadcasted_iota(jnp.int32, (1, dh.shape[1]), 1)
        dh = jnp.where((col % w) != (w - 1), dh, 0.0)

        # Vertical neighbours: x[c + W] - x[c]; every position of this slice is
        # a valid vertical pair (stays inside the plane), no mask needed.
        dv = jnp.abs(x[:, w:] - x[:, :-w])                 # (p, (H-1)*W)

        if need_mask:
            # Planes past B*C (ragged last block / clamped duplicate blocks)
            # must not contribute.  jnp.where is NaN-safe for garbage rows.
            bid = pl.program_id(0) * nj + pl.program_id(1)
            row = lax.broadcasted_iota(jnp.int32, (p, 1), 0)
            valid = (bid * p + row) < bc                   # (p, 1)
            dh = jnp.where(valid, dh, 0.0)
            dv = jnp.where(valid, dv, 0.0)

        # Pure elementwise VPU accumulation — no per-step reduction, no
        # per-step output store (HBM writeback happens once at grid end).
        acc_h_ref[...] += dh
        acc_v_ref[...] += dv

    return kernel


def total_variation_pallas(
    x: jax.Array,
    reduce_var: bool = True,
    *,
    block_bytes: int = 2 * 1024 * 1024,
) -> jax.Array:
    """x: (B, C, H, W). Returns a scalar TV loss matching the PyTorch reference."""
    b, c, h, w = x.shape

    if h < 2 or w < 2:
        # Degenerate spatial size: mirror the reference directly.
        return _tv_jax(x, reduce_var)

    bc = b * c
    hw = h * w
    x_flat = x.reshape(bc, hw)           # free, row-major contiguous reshape

    # --- choose how many planes to pack per grid step (~block_bytes of input)
    itemsize = x.dtype.itemsize
    p = max(1, int(block_bytes) // (hw * itemsize))
    if p >= bc:
        p = bc                           # a single block holds everything
    else:
        # second-to-last block dim must be a multiple of 8 (or the full dim)
        p = max(8, (p // 8) * 8)
        p = min(p, bc)

    # TODO(synk): very large planes (block > ~4 MiB even at the minimum 8
    # planes) would need an extra H-tiling axis with a one-row halo to stay in
    # v7x's 64 MiB VMEM; fall back to plain JAX for those shapes for now.
    if p * hw * 4 > 4 * 1024 * 1024:
        return _tv_jax(x, reduce_var)

    nb = -(-bc // p)                     # number of plane blocks
    ncores = 2 if nb >= 2 else 1         # v7x megacore: one accumulator row/TC
    nj = -(-nb // ncores)                # inner (reduction) grid length
    need_mask = (ncores * nj * p) > bc   # ragged / duplicated blocks present

    lh = hw - 1                          # horizontal-diff length per plane
    lv = hw - w                          # vertical-diff length per plane

    kernel = _make_tv_kernel(p=p, w=w, bc=bc, nj=nj, need_mask=need_mask)

    acc_h, acc_v = pl.pallas_call(
        kernel,
        out_shape=[
            jax.ShapeDtypeStruct((ncores, p, lh), jnp.float32),
            jax.ShapeDtypeStruct((ncores, p, lv), jnp.float32),
        ],
        grid_spec=pltpu.PrefetchScalarGridSpec(
            num_scalar_prefetch=0,
            grid=(ncores, nj),
            in_specs=[
                pl.BlockSpec(
                    (p, hw),
                    # Clamp out-of-range block ids (those blocks are fully
                    # masked in the kernel) so the DMA never walks off the end.
                    lambda i, j: (jnp.minimum(i * nj + j, nb - 1), 0),
                ),
            ],
            out_specs=[
                pl.BlockSpec((None, p, lh), lambda i, j: (i, 0, 0)),
                pl.BlockSpec((None, p, lv), lambda i, j: (i, 0, 0)),
            ],
        ),
        compiler_params=pltpu.CompilerParams(
            dimension_semantics=("parallel", "arbitrary"),
            vmem_limit_bytes=48 * 1024 * 1024,
        ),
        cost_estimate=pl.CostEstimate(
            flops=6 * x.size,
            transcendentals=0,
            bytes_accessed=x.size * itemsize + 4 * ncores * p * (lh + lv),
        ),
    )(x_flat)

    # Tiny final reduction + normalization in plain JAX (cheap scalar glue).
    horz_sum = jnp.sum(acc_h)
    vert_sum = jnp.sum(acc_v)

    if reduce_var:
        n_horz = c * h * (w - 1)
        n_vert = c * (h - 1) * w
    else:
        n_horz = 1
        n_vert = 1

    var = horz_sum / n_horz + vert_sum / n_vert
    var = var / b
    return var.astype(x.dtype)


if __name__ == "__main__":
    key, k2 = jax.random.split(jax.random.PRNGKey(0))

    # Primary case (module's expected NCHW input at small test size).
    B, C, H, W = 2, 4, 16, 16
    x = jax.random.normal(key, (B, C, H, W), dtype=jnp.float32)
    out = jax.block_until_ready(total_variation_pallas(x))
    ref = _tv_jax(x)
    assert jnp.allclose(out, ref, rtol=1e-5, atol=1e-5), (out, ref)

    # Second case: forces multiple plane blocks, a ragged (masked) last block,
    # and the 2-way per-core accumulator split.
    x2 = jax.random.normal(k2, (5, 4, 16, 16), dtype=jnp.float32)
    out2 = jax.block_until_ready(
        total_variation_pallas(x2, block_bytes=8 * 1024)
    )
    ref2 = _tv_jax(x2)
    assert jnp.allclose(out2, ref2, rtol=1e-5, atol=1e-5), (out2, ref2)

    print("KERNEL_OK")
</pallas_src>

<mosaic_0001>
module attributes {stable_mosaic.version = 11 : i64} {
  func.func @kernel(%arg0: i32, %arg1: i32, %arg2: memref<8x256xf32, #tpu.memory_space<vmem>>, %arg3: memref<1x8x255xf32, #tpu.memory_space<vmem>>, %arg4: memref<1x8x240xf32, #tpu.memory_space<vmem>>) attributes {dimension_semantics = [#tpu.dimension_semantics<parallel>, #tpu.dimension_semantics<arbitrary>], iteration_bounds = array<i64: 1, 1>, scalar_prefetch = 0 : i64, scratch_operands = 0 : i64, tpu.core_type = #tpu.core_type<tc>, window_params = [{transform_indices = @transform_0, window_bounds = array<i64: 8, 256>}, {transform_indices = @transform_1, window_bounds = array<i64: 1, 8, 255>}, {transform_indices = @transform_2, window_bounds = array<i64: 1, 8, 240>}]} {
    %c0_i32 = arith.constant 0 : i32
    %0 = arith.cmpi eq, %arg1, %c0_i32 : i32
    %1 = arith.extui %0 : i1 to i32
    %c0_i32_0 = arith.constant 0 : i32
    %2 = arith.cmpi ne, %1, %c0_i32_0 : i32
    scf.if %2 {
      %cst_18 = arith.constant 0.000000e+00 : f32
      %47 = vector.broadcast %cst_18 : f32 to vector<8x255xf32>
      %c0_19 = arith.constant 0 : index
      %c0_20 = arith.constant 0 : index
      %c0_21 = arith.constant 0 : index
      %48 = vector.load %arg3[%c0_19, %c0_20, %c0_21] : memref<1x8x255xf32, #tpu.memory_space<vmem>>, vector<1x8x255xf32>
      %49 = vector.shape_cast %48 : vector<1x8x255xf32> to vector<8x255xf32>
      %50 = vector.shape_cast %47 : vector<8x255xf32> to vector<1x8x255xf32>
      tpu.vector_store %arg3[%c0_19, %c0_20, %c0_21], %50 {strides = array<i32>} : memref<1x8x255xf32, #tpu.memory_space<vmem>>, vector<1x8x255xf32>,
      %cst_22 = arith.constant 0.000000e+00 : f32
      %51 = vector.broadcast %cst_22 : f32 to vector<8x240xf32>
      %c0_23 = arith.constant 0 : index
      %c0_24 = arith.constant 0 : index
      %c0_25 = arith.constant 0 : index
      %52 = vector.load %arg4[%c0_23, %c0_24, %c0_25] : memref<1x8x240xf32, #tpu.memory_space<vmem>>, vector<1x8x240xf32>
      %53 = vector.shape_cast %52 : vector<1x8x240xf32> to vector<8x240xf32>
      %54 = vector.shape_cast %51 : vector<8x240xf32> to vector<1x8x240xf32>
      tpu.vector_store %arg4[%c0_23, %c0_24, %c0_25], %54 {strides = array<i32>} : memref<1x8x240xf32, #tpu.memory_space<vmem>>, vector<1x8x240xf32>,
    } else {
    }
    %c0 = arith.constant 0 : index
    %c0_1 = arith.constant 0 : index
    %3 = vector.load %arg2[%c0, %c0_1] : memref<8x256xf32, #tpu.memory_space<vmem>>, vector<8x256xf32>
    %4 = vector.extract_strided_slice %3 {offsets = [0, 1], sizes = [8, 255], strides = [1, 1]} : vector<8x256xf32> to vector<8x255xf32>
    %5 = vector.extract_strided_slice %3 {offsets = [0, 0], sizes = [8, 255], strides = [1, 1]} : vector<8x256xf32> to vector<8x255xf32>
    %6 = arith.subf %4, %5 : vector<8x255xf32>
    %7 = math.absf %6 : vector<8x255xf32>
    %8 = tpu.iota {dimensions = array<i32: 1>} : vector<1x255xi32>
    %c16_i32 = arith.constant 16 : i32
    %c0_i32_2 = arith.constant 0 : i32
    %9 = arith.cmpi eq, %c16_i32, %c0_i32_2 : i32
    %c1_i32 = arith.constant 1 : i32
    %10 = arith.select %9, %c1_i32, %c16_i32 : i32
    %11 = vector.broadcast %10 : i32 to vector<1x255xi32>
    %12 = arith.remsi %8, %11 : vector<1x255xi32>
    %c0_i32_3 = arith.constant 0 : i32
    %13 = vector.broadcast %c0_i32_3 : i32 to vector<1x255xi32>
    %14 = arith.cmpi ne, %12, %13 : vector<1x255xi32>
    %c0_i32_4 = arith.constant 0 : i32
    %15 = vector.broadcast %c0_i32_4 : i32 to vector<1x255xi32>
    %16 = arith.cmpi slt, %12, %15 : vector<1x255xi32>
    %c0_i32_5 = arith.constant 0 : i32
    %17 = arith.cmpi slt, %10, %c0_i32_5 : i32
    %18 = vector.broadcast %17 : i1 to vector<1x255xi1>
    %19 = vector.broadcast %18 : vector<1x255xi1> to vector<1x255xi1>
    %20 = arith.xori %16, %19 : vector<1x255xi1>
    %21 = arith.andi %20, %14 : vector<1x255xi1>
    %22 = vector.broadcast %10 : i32 to vector<1x255xi32>
    %23 = arith.addi %12, %22 : vector<1x255xi32>
    %24 = arith.select %21, %23, %12 : vector<1x255xi1>, vector<1x255xi32>
    %c15_i32 = arith.constant 15 : i32
    %25 = vector.broadcast %c15_i32 : i32 to vector<1x255xi32>
    %26 = arith.cmpi ne, %24, %25 : vector<1x255xi32>
    %cst = arith.constant 0.000000e+00 : f32
    %27 = vector.shape_cast %26 : vector<1x255xi1> to vector<1x255xi1>
    %28 = vector.broadcast %27 : vector<1x255xi1> to vector<8x255xi1>
    %29 = vector.broadcast %cst : f32 to vector<8x255xf32>
    %30 = arith.select %28, %7, %29 : vector<8x255xi1>, vector<8x255xf32>
    %31 = vector.extract_strided_slice %3 {offsets = [0, 16], sizes = [8, 240], strides = [1, 1]} : vector<8x256xf32> to vector<8x240xf32>
    %32 = vector.extract_strided_slice %3 {offsets = [0, 0], sizes = [8, 240], strides = [1, 1]} : vector<8x256xf32> to vector<8x240xf32>
    %33 = arith.subf %31, %32 : vector<8x240xf32>
    %34 = math.absf %33 : vector<8x240xf32>
    %c0_6 = arith.constant 0 : index
    %c0_7 = arith.constant 0 : index
    %c0_8 = arith.constant 0 : index
    %35 = vector.load %arg3[%c0_6, %c0_7, %c0_8] : memref<1x8x255xf32, #tpu.memory_space<vmem>>, vector<1x8x255xf32>
    %36 = vector.shape_cast %35 : vector<1x8x255xf32> to vector<8x255xf32>
    %37 = arith.addf %36, %30 : vector<8x255xf32>
    %c0_9 = arith.constant 0 : index
    %c0_10 = arith.constant 0 : index
    %c0_11 = arith.constant 0 : index
    %38 = vector.load %arg3[%c0_9, %c0_10, %c0_11] : memref<1x8x255xf32, #tpu.memory_space<vmem>>, vector<1x8x255xf32>
    %39 = vector.shape_cast %38 : vector<1x8x255xf32> to vector<8x255xf32>
    %40 = vector.shape_cast %37 : vector<8x255xf32> to vector<1x8x255xf32>
    tpu.vector_store %arg3[%c0_9, %c0_10, %c0_11], %40 {strides = array<i32>} : memref<1x8x255xf32, #tpu.memory_space<vmem>>, vector<1x8x255xf32>,
    %c0_12 = arith.constant 0 : index
    %c0_13 = arith.constant 0 : index
    %c0_14 = arith.constant 0 : index
    %41 = vector.load %arg4[%c0_12, %c0_13, %c0_14] : memref<1x8x240xf32, #tpu.memory_space<vmem>>, vector<1x8x240xf32>
    %42 = vector.shape_cast %41 : vector<1x8x240xf32> to vector<8x240xf32>
    %43 = arith.addf %42, %34 : vector<8x240xf32>
    %c0_15 = arith.constant 0 : index
    %c0_16 = arith.constant 0 : index
    %c0_17 = arith.constant 0 : index
    %44 = vector.load %arg4[%c0_15, %c0_16, %c0_17] : memref<1x8x240xf32, #tpu.memory_space<vmem>>, vector<1x8x240xf32>
    %45 = vector.shape_cast %44 : vector<1x8x240xf32> to vector<8x240xf32>
    %46 = vector.shape_cast %43 : vector<8x240xf32> to vector<1x8x240xf32>
    tpu.vector_store %arg4[%c0_15, %c0_16, %c0_17], %46 {strides = array<i32>} : memref<1x8x240xf32, #tpu.memory_space<vmem>>, vector<1x8x240xf32>,
    return
  }
  func.func @transform_0(%arg0: i32, %arg1: i32) -> (i32, i32) {
    %c1_i32 = arith.constant 1 : i32
    %0 = arith.muli %arg0, %c1_i32 : i32
    %1 = arith.addi %0, %arg1 : i32
    %c0_i32 = arith.constant 0 : i32
    %2 = arith.minsi %1, %c0_i32 : i32
    %c0_i32_0 = arith.constant 0 : i32
    %c0_i32_1 = arith.constant 0 : i32
    return %2, %c0_i32_0 : i32, i32
  }
  func.func @transform_1(%arg0: i32, %arg1: i32) -> (i32, i32, i32) {
    %c0_i32 = arith.constant 0 : i32
    %c0_i32_0 = arith.constant 0 : i32
    %c0_i32_1 = arith.constant 0 : i32
    return %arg0, %c0_i32, %c0_i32_0 : i32, i32, i32
  }
  func.func @transform_2(%arg0: i32, %arg1: i32) -> (i32, i32, i32) {
    %c0_i32 = arith.constant 0 : i32
    %c0_i32_0 = arith.constant 0 : i32
    %c0_i32_1 = arith.constant 0 : i32
    return %arg0, %c0_i32, %c0_i32_0 : i32, i32, i32
  }
}

</mosaic_0001>

<bundles_post_ra>
// kernel: tpu_custom_call.1
= control target key start
LH: loop header
LB: loop body
LE: loop exit
PB: predicated region body
PF: predicated region fallthrough
CT: control target
= control target key end

     0   :  { %8 = vsyncpa [#allocation3], 0  ;;  %s320_s0 = inlined_call_operand.hbm [shape: f32[8,256], index: 0, kind: input, shape index: {}]   ;;  %s321_s1 = inlined_call_operand.hbm [shape: f32[1,8,255], index: 1, kind: output, shape index: {0}]   ;;  %s322_s2 = inlined_call_operand.hbm [shape: f32[1,8,240], index: 2, kind: output, shape index: {1}]  }
   0x1   :  { %9 = vsyncpa [#allocation4], 0 }
   0x2   :  { %10 = vsyncpa [#allocation7], 0  ;;  %s249_s9 = smov [#allocation2]   ;;  %s177_s13 = scalar_lea.hbm %s320_s0, 256 }
   0x3   :  { %s23_s10 = sshll.u32 %s249_s9, 4  ;;  %p178_p0 = scmp.ne.s32.totalorder %s320_s0, %s177_s13  ;;  %s24_s10 = int_to_ptr.vmem [resolvable:$true] %s23_s10 }
   0x4   :  { %p181_p1 = scmp.lt.u32.totalorder %s177_s13, %s320_s0 }
   0x6   :  { %p183_p2 = pnand %p181_p1, %p178_p0 }
   0x8   :  { %186 = shalt.err (!%p183_p2)
}
   0x9   :  { %s187_s18 = scalar_lea.vmem %s24_s10, 256  ;;  %p192_p4 = scmp.lt.s32.totalorder %s24_s10, %s24_s10 }
   0xa   :  { %p188_p3 = scmp.ne.s32.totalorder %s24_s10, %s187_s18  ;;  %p193_p5 = scmp.lt.s32.totalorder %s187_s18, %s187_s18 }
   0xc   :  { %p194_p6 = por %p193_p5, %p192_p4 }
   0xe   :  { %p195_p7 = pnand %p194_p6, %p188_p3 }
  0x10   :  { %198 = shalt.err (!%p195_p7)
}
  0x11   :  { %26 = dma.hbm_to_vmem [thread:$0]  %s320_s0, 256, %s24_s10, [#allocation3]  }
  0x12   :  { %243 = dma.done.wait [#allocation3], 256  }
  0x13   :  { %244 = vsyncadd [#allocation3], 4294967040  ;;  %v43_v0 = vld [vmem:[#allocation2] sm:$0xff]  ;;  %s250_s21 = smov 16   ;;  %s251_s22 = smov 1   ;;  %v44_v1 = vld [vmem:[#allocation2 + $0x8] sm:$0xff]  ;;  %v59_v17 = vlaneseq }
  0x14   :  { %104 = vrot.lane.b32.xlu1 %v43_v0, %s250_s21  ;;  %47 = vrot.lane.b32.xlu0 %v43_v0, %s251_s22  ;;  %vm38_vm0 = vcmask 1039360   ;;  %v252_v2 = vmov 0.0   ;;  %vm41_vm1 = vcmask 916480   ;;  %vm108_vm2 = vcmask 130048   ;;  %s253_s0 = smov 127   ;;  %s254_s23 = smov 112  }
  0x15   :  { %39 = vst.msk [vmem:[#allocation5 + $0x8] sm:$0xff] %vm38_vm0, %v252_v2  ;;  %vm51_vm3 = vcmask 7168   ;;  %v60_v18 = vand.u32 127, %v59_v17  ;;  %s255_s24 = smov [#allocation5]   ;;  %s256_s26 = smov [#allocation6]  }
  0x16   :  { %42 = vst.msk [vmem:[#allocation6 + $0x8] sm:$0xff] %vm41_vm1, %v252_v2  ;;  %s144_s25 = sshll.u32 %s255_s24, 4  ;;  %s154_s27 = sshll.u32 %s256_s26, 4  ;;  %s145_s25 = int_to_ptr.vmem [resolvable:$true] %s144_s25  ;;  %s155_s27 = int_to_ptr.vmem [resolvable:$true] %s154_s27 }
  0x17   :  { %v61_v19 = vadd.s32 128, %v60_v18  ;;  %v66_v21 = vand.u32 15, %v60_v18  ;;  %s199_s28 = scalar_lea.vmem %s145_s25, 256  ;;  %p204_p9 = scmp.lt.s32.totalorder %s145_s25, %s145_s25 }
  0x18   :  { %106 = vrot.lane.b32.xlu1 %v44_v1, %s250_s21  ;;  %49 = vrot.lane.b32.xlu0 %v44_v1, %s251_s22  ;;  %p200_p8 = scmp.ne.s32.totalorder %s145_s25, %s199_s28  ;;  %p205_p10 = scmp.lt.s32.totalorder %s199_s28, %s199_s28 }
  0x19   :  { %v73_v20 = vand.u32 15, %v61_v19  ;;  %vm286_vm5 = vcmp.ne.s32.totalorder %v66_v21, 15 }
  0x1a   :  { %p206_p11 = por %p205_p10, %p204_p9 }
  0x1b   :  { %vm87_vm4 = vcmp.ne.s32.totalorder %v73_v20, 15 }
  0x1c   :  { %v117_v24 = vld [vmem:[#allocation5 + $0x8] sm:$0xff]  ;;  %p207_p12 = pnand %p206_p11, %p200_p8 }
  0x1d   :  { %v123_v30 = vld [vmem:[#allocation6 + $0x8] sm:$0xff] }
  0x86   :  { %v105_v3 = vpop.permute.xlu1 %104  ;;  %v48_v4 = vpop.permute.xlu0 %47 }
  0x87   :  { %v112_v5 = vsub.f32 %v43_v0, %v105_v3  ;;  %v55_v6 = vsub.f32 %v43_v0, %v48_v4 }
  0x89   :  { %v57_v7 = vand.u32 2147483647, %v55_v6  ;;  %v114_v10 = vand.u32 2147483647, %v112_v5 }
  0x8a   :  { %v107_v8 = vpop.permute.xlu1 %106  ;;  %v50_v9 = vpop.permute.xlu0 %49 }
  0x8b   :  { %v109_v11 = vsel %vm108_vm2, %v105_v3, %v107_v8  ;;  %v52_v12 = vsel %vm51_vm3, %v48_v4, %v50_v9  ;;  %94 = vrot.lane.b32.xlu0 %v57_v7, %s253_s0 }
  0x8c   :  { %v56_v13 = vsub.f32 %v44_v1, %v52_v12  ;;  %v113_v14 = vsub.f32 %v44_v1, %v109_v11 }
  0x8e   :  { %v58_v15 = vand.u32 2147483647, %v56_v13  ;;  %v115_v16 = vand.u32 2147483647, %v113_v14 }
  0x8f   :  { %126 = vrot.lane.b32.xlu0 %v114_v10, %s254_s23 }
  0x90   :  { %96 = vrot.lane.b32.xlu1 %v58_v15, %s253_s0 }
  0x94   :  { %128 = vrot.lane.b32.xlu1 %v115_v16, %s254_s23 }
  0xfd   :  { %v95_v22 = vpop.permute.xlu0 %94 }
 0x101   :  { %v127_v31 = vpop.permute.xlu0 %126 }
 0x102   :  { %v97_v25 = vpop.permute.xlu1 %96 }
 0x103   :  { %v99_v26 = vsel %vm38_vm0, %v95_v22, %v97_v25  ;;  %v103_v27 = vsel %vm87_vm4, %v97_v25, 0.0 }
 0x104   :  { %v102_v28 = vsel %vm286_vm5, %v99_v26, 0.0  ;;  %v119_v29 = vadd.f32 %v117_v24, %v103_v27 }
 0x105   :  { %120 = vst [vmem:[#allocation5] sm:$0xff] %v102_v28 }
 0x106   :  { %121 = vst.msk [vmem:[#allocation5 + $0x8] sm:$0xff] %vm38_vm0, %v119_v29  ;;  %v129_v32 = vpop.permute.xlu1 %128 }
 0x107   :  { %v131_v33 = vsel %vm41_vm1, %v127_v31, %v129_v32  ;;  %v135_v34 = vadd.f32 %v129_v32, %v123_v30 }
 0x108   :  { %210 = shalt.err (!%p207_p12)
}
 0x109   :  { %s211_s3 = scalar_lea.hbm %s321_s1, 256 }
 0x10a   :  { %p212_p13 = scmp.ne.s32.totalorder %s321_s1, %s211_s3  ;;  %p215_p0 = scmp.lt.u32.totalorder %s211_s3, %s321_s1 }
 0x10c   :  { %p217_p1 = pnand %p215_p0, %p212_p13 }
 0x10e   :  { %220 = shalt.err (!%p217_p1)
}
 0x10f   :  { %147 = dma.vmem_to_hbm [thread:$0]  %s145_s25, 256, %s321_s1, [#allocation4]   ;;  %137 = vst.msk [vmem:[#allocation6 + $0x8] sm:$0xff] %vm41_vm1, %v135_v34  ;;  %136 = vst [vmem:[#allocation6] sm:$0xff] %v131_v33 }
 0x110   :  { %s221_s10 = scalar_lea.vmem %s155_s27, 256  ;;  %p226_p3 = scmp.lt.s32.totalorder %s155_s27, %s155_s27 }
 0x111   :  { %p222_p2 = scmp.ne.s32.totalorder %s155_s27, %s221_s10  ;;  %p227_p4 = scmp.lt.s32.totalorder %s221_s10, %s221_s10 }
 0x113   :  { %p228_p5 = por %p227_p4, %p226_p3 }
 0x115   :  { %p229_p6 = pnand %p228_p5, %p222_p2 }
 0x117   :  { %232 = shalt.err (!%p229_p6)
}
 0x118   :  { %s233_s13 = scalar_lea.hbm %s322_s2, 256 }
 0x119   :  { %p234_p7 = scmp.ne.s32.totalorder %s322_s2, %s233_s13  ;;  %p237_p8 = scmp.lt.u32.totalorder %s233_s13, %s322_s2 }
 0x11b   :  { %p239_p9 = pnand %p237_p8, %p234_p7 }
 0x11d   :  { %242 = shalt.err (!%p239_p9)
}
 0x11e   :  { %157 = dma.vmem_to_hbm [thread:$0]  %s155_s27, 256, %s322_s2, [#allocation7]  }
 0x11f   :  { %245 = dma.done.wait [#allocation4], 256  }
 0x120   :  { %246 = vsyncadd [#allocation4], 4294967040 }
 0x121   :  { %247 = dma.done.wait [#allocation7], 256  }
 0x122   :  { %248 = vsyncadd [#allocation7], 4294967040 }
 0x123   :  { %164 = vsyncpa [#allocation3], 1 }
 0x124   :  { %165 = vsyncpa [#allocation4], 1 }
 0x125   :  { %166 = vsyncpa [#allocation7], 1 }

</bundles_post_ra>
